<compile_context>
chip_gen: v5e
topology: v5e:2x2
jax: 0.10.0
libtpu: 0.0.40
codegen_flags: <defaults>
</compile_context>

<pallas_src>
import functools

import jax
import jax.numpy as jnp
import numpy as np
from jax.experimental import pallas as pl
from jax.experimental.pallas import tpu as pltpu

_HIGHEST = jax.lax.Precision.HIGHEST


def _dw_se_conv_kernel(x_ref, w1_ref, b1_ref, wdw_ref, bdw_ref, mask_ref,
                       wse1_ref, bse_ref, wse2_ref, w2_ref, b2_ref,
                       out_ref, *, B_TILE, H, W):
    HW = H * W

    for b in range(B_TILE):                                   # static unroll
        # ---- conv1 part A: 1x1 pointwise (bf16 MXU) + BN shift + ReLU6 -----
        x2d = x_ref[b]                                        # (C_in, HW) bf16
        h1 = jnp.dot(w1_ref[...], x2d, preferred_element_type=jnp.float32)
        h1 = jnp.clip(h1 + b1_ref[...], 0.0, 6.0)             # (C1, HW) f32

        # ---- conv1 part B: depthwise 3x3, pad=1 (lane rolls + masks) -------
        acc = wdw_ref[4] * h1                                 # center tap (no mask)
        for t in range(9):
            if t == 4:
                continue
            di, dj = divmod(t, 3)
            delta = (di - 1) * W + (dj - 1)                   # flat neighbor offset
            tap = pltpu.roll(h1, (-delta) % HW, axis=1)
            acc = acc + wdw_ref[t] * (tap * mask_ref[t])      # (C1,1)*(C1,HW)*(1,HW)
        h2 = jnp.clip(acc + bdw_ref[...], 0.0, 6.0)           # (C1, HW)

        # ---- SE on pooled vector: avg -> 1x1 -> ReLU -> 1x1 -> Hardsigmoid -
        avg = jnp.sum(h2, axis=1, keepdims=True) * (1.0 / HW) # (C1, 1)
        hid = jnp.dot(wse1_ref[...], avg,
                      precision=_HIGHEST, preferred_element_type=jnp.float32)
        hid = jnp.maximum(hid + bse_ref[...], 0.0)            # (E, 1)
        gate = jnp.dot(wse2_ref[...], hid,
                       precision=_HIGHEST, preferred_element_type=jnp.float32)
        gate = jnp.clip(gate * (1.0 / 6.0) + 0.5, 0.0, 1.0)   # Hardsigmoid (C1,1)
        h3 = h2 * gate                                        # sublane broadcast

        # ---- conv2: 1x1 pointwise (bf16 MXU) + BN shift + ReLU6 ------------
        o = jnp.dot(w2_ref[...], h3.astype(jnp.bfloat16),
                    preferred_element_type=jnp.float32)
        out_ref[b] = jnp.clip(o + b2_ref[...], 0.0, 6.0).astype(out_ref.dtype)


def _full_spec(shape):
    # Whole-array VMEM block, grid-invariant.
    return pl.BlockSpec(shape, lambda n: (0,) * len(shape))


def _pick_batch_tile(N, cap=8):
    # Largest divisor of N that is <= cap and keeps >= 2 grid steps (megacore).
    if N <= 1:
        return 1
    target = min(cap, max(1, N // 2))
    for bt in range(target, 0, -1):
        if N % bt == 0:
            return bt
    return 1


def _edge_masks(H, W):
    # Grid-invariant depthwise zero-padding masks, one per 3x3 tap: (9, 1, HW).
    HW = H * W
    idx = np.arange(HW)
    row, col = idx // W, idx % W
    masks = np.ones((9, HW), np.float32)
    for di in range(3):
        for dj in range(3):
            m = np.ones(HW, np.float32)
            if di == 0:
                m *= (row >= 1)
            elif di == 2:
                m *= (row <= H - 2)
            if dj == 0:
                m *= (col >= 1)
            elif dj == 2:
                m *= (col <= W - 2)
            masks[di * 3 + dj] = m
    return jnp.asarray(masks).reshape(9, 1, HW)


def dw_se_conv(x, params):
    """x: (N, C_in, H, W) float32, NCHW (PyTorch convention)."""
    N, C_in, H, W = x.shape
    w1, bn1, wdw, bndw, wse1, bnse, wse2, w2, bn2 = params
    C1 = w1.shape[0]
    E = wse1.shape[0]
    C_out = w2.shape[0]
    HW = H * W

    # Lane-dense (C, HW) layout; bf16 matmul operands (one-time XLA casts).
    x2 = x.reshape(N, C_in, HW).astype(jnp.bfloat16)

    # Fold BN scales into the preceding weights; keep only shifts for the kernel.
    w1f = (bn1[0][:, None] * w1).astype(jnp.bfloat16)         # (C1, C_in)
    b1 = bn1[1].reshape(C1, 1)
    wdw9 = jnp.transpose(bndw[0][:, None] * wdw).reshape(9, C1, 1)
    bdw = bndw[1].reshape(C1, 1)
    wse1f = bnse[0][:, None] * wse1                           # (E, C1) f32
    bse = bnse[1].reshape(E, 1)
    w2f = (bn2[0][:, None] * w2).astype(jnp.bfloat16)         # (C_out, C1)
    b2 = bn2[1].reshape(C_out, 1)

    masks = _edge_masks(H, W)                                 # (9, 1, HW) f32

    B_TILE = _pick_batch_tile(N)
    grid = (N // B_TILE,)

    kernel = functools.partial(_dw_se_conv_kernel, B_TILE=B_TILE, H=H, W=W)

    out = pl.pallas_call(
        kernel,
        out_shape=jax.ShapeDtypeStruct((N, C_out, HW), jnp.float32),
        grid=grid,
        in_specs=[
            pl.BlockSpec((B_TILE, C_in, HW), lambda n: (n, 0, 0)),
            _full_spec((C1, C_in)),
            _full_spec((C1, 1)),
            _full_spec((9, C1, 1)),
            _full_spec((C1, 1)),
            _full_spec((9, 1, HW)),
            _full_spec((E, C1)),
            _full_spec((E, 1)),
            _full_spec((C1, E)),
            _full_spec((C_out, C1)),
            _full_spec((C_out, 1)),
        ],
        out_specs=pl.BlockSpec((B_TILE, C_out, HW), lambda n: (n, 0, 0)),
        compiler_params=pltpu.CompilerParams(
            dimension_semantics=("parallel",)),
    )(x2, w1f, b1, wdw9, bdw, masks, wse1f, bse, wse2, w2f, b2)
    return out.reshape(N, C_out, H, W)


# ------------------------- parameter construction ---------------------------

def _fold_bn(gamma, beta, mean, var, eps=1e-5):
    # Eval-mode BatchNorm folded into per-channel scale/shift.
    scale = gamma / jnp.sqrt(var + eps)
    shift = beta - mean * scale
    return jnp.stack([scale, shift], axis=0)  # (2, C)


def init_params(key, in_channels, out_channels, T=1):
    C1 = in_channels * T
    E = max(C1 // 4, 8)
    ks = jax.random.split(key, 9)
    w1 = 0.3 * jax.random.normal(ks[0], (C1, in_channels), jnp.float32)
    wdw = 0.3 * jax.random.normal(ks[1], (C1, 9), jnp.float32)   # (C1,3,3) flattened
    wse1 = 0.3 * jax.random.normal(ks[2], (E, C1), jnp.float32)
    wse2 = 0.3 * jax.random.normal(ks[3], (C1, E), jnp.float32)
    w2 = 0.3 * jax.random.normal(ks[4], (out_channels, C1), jnp.float32)

    def bn(k, c):
        k1, k2, k3, k4 = jax.random.split(k, 4)
        gamma = 1.0 + 0.1 * jax.random.normal(k1, (c,), jnp.float32)
        beta = 0.1 * jax.random.normal(k2, (c,), jnp.float32)
        mean = 0.1 * jax.random.normal(k3, (c,), jnp.float32)
        var = jax.random.uniform(k4, (c,), jnp.float32, minval=0.5, maxval=1.5)
        return _fold_bn(gamma, beta, mean, var)

    bn1 = bn(ks[5], C1)
    bndw = bn(ks[6], C1)
    bnse = bn(ks[7], E)
    bn2 = bn(ks[8], out_channels)
    return (w1, bn1, wdw, bndw, wse1, bnse, wse2, w2, bn2)


# ------------------------- pure-JAX reference (for checking) ----------------

def reference(x, params):
    """NCHW reference that mirrors the kernel's bf16 matmul-operand rounding."""
    w1, bn1, wdw, bndw, wse1, bnse, wse2, w2, bn2 = params
    N, C_in, H, W = x.shape
    C1 = w1.shape[0]
    bf = lambda a: a.astype(jnp.bfloat16).astype(jnp.float32)
    h = jnp.einsum('nchw,oc->nohw', bf(x), bf(bn1[0][:, None] * w1),
                   precision=_HIGHEST)
    h = jnp.clip(h + bn1[1][None, :, None, None], 0, 6)
    wdwf = (bndw[0][:, None] * wdw).reshape(C1, 3, 3)
    hp = jnp.pad(h, ((0, 0), (0, 0), (1, 1), (1, 1)))
    acc = jnp.zeros_like(h)
    for di in range(3):
        for dj in range(3):
            acc = acc + wdwf[:, di, dj][None, :, None, None] * hp[:, :, di:di + H, dj:dj + W]
    h = jnp.clip(acc + bndw[1][None, :, None, None], 0, 6)
    avg = h.mean(axis=(2, 3))                                    # (N, C1)
    z = jnp.dot(avg, (bnse[0][:, None] * wse1).T, precision=_HIGHEST)
    z = jnp.maximum(z + bnse[1][None, :], 0.0)
    g = jnp.dot(z, wse2.T, precision=_HIGHEST)
    g = jnp.clip(g / 6.0 + 0.5, 0.0, 1.0)                        # Hardsigmoid
    h = h * g[:, :, None, None]
    o = jnp.einsum('nchw,oc->nohw', bf(h), bf(bn2[0][:, None] * w2),
                   precision=_HIGHEST)
    o = jnp.clip(o + bn2[1][None, :, None, None], 0, 6)
    return o


if __name__ == "__main__":
    key = jax.random.PRNGKey(0)
    kx, kp = jax.random.split(key)
    N, C_in, H, W = 2, 4, 16, 16
    C_out = 8
    x = jax.random.normal(kx, (N, C_in, H, W), jnp.float32)
    params = init_params(kp, C_in, C_out, T=1)

    out = dw_se_conv(x, params)
    out = jax.block_until_ready(out)

    ref = reference(x, params)
    # Tolerance headroom: MXU accumulation-order differences + occasional
    # single-ulp bf16 rounding flips of intermediate operands.
    np.testing.assert_allclose(np.asarray(out), np.asarray(ref),
                               rtol=2e-2, atol=2e-2)
    print("KERNEL_OK")
</pallas_src>

<mosaic_0001>
module attributes {stable_mosaic.version = 11 : i64} {
  func.func @_dw_se_conv_kernel(%arg0: i32, %arg1: memref<1x4x256xbf16, #tpu.memory_space<vmem>>, %arg2: memref<4x4xbf16, #tpu.memory_space<vmem>>, %arg3: memref<4x1xf32, #tpu.memory_space<vmem>>, %arg4: memref<9x4x1xf32, #tpu.memory_space<vmem>>, %arg5: memref<4x1xf32, #tpu.memory_space<vmem>>, %arg6: memref<9x1x256xf32, #tpu.memory_space<vmem>>, %arg7: memref<8x4xf32, #tpu.memory_space<vmem>>, %arg8: memref<8x1xf32, #tpu.memory_space<vmem>>, %arg9: memref<4x8xf32, #tpu.memory_space<vmem>>, %arg10: memref<8x4xbf16, #tpu.memory_space<vmem>>, %arg11: memref<8x1xf32, #tpu.memory_space<vmem>>, %arg12: memref<1x8x256xf32, #tpu.memory_space<vmem>>) attributes {dimension_semantics = [#tpu.dimension_semantics<parallel>], iteration_bounds = array<i64: 2>, scalar_prefetch = 0 : i64, scratch_operands = 0 : i64, tpu.core_type = #tpu.core_type<tc>, window_params = [{transform_indices = @transform_0, window_bounds = array<i64: 1, 4, 256>}, {pipeline_mode = #tpu.pipeline_mode<synchronous>, transform_indices = @transform_1, window_bounds = array<i64: 4, 4>}, {pipeline_mode = #tpu.pipeline_mode<synchronous>, transform_indices = @transform_2, window_bounds = array<i64: 4, 1>}, {pipeline_mode = #tpu.pipeline_mode<synchronous>, transform_indices = @transform_3, window_bounds = array<i64: 9, 4, 1>}, {pipeline_mode = #tpu.pipeline_mode<synchronous>, transform_indices = @transform_4, window_bounds = array<i64: 4, 1>}, {pipeline_mode = #tpu.pipeline_mode<synchronous>, transform_indices = @transform_5, window_bounds = array<i64: 9, 1, 256>}, {pipeline_mode = #tpu.pipeline_mode<synchronous>, transform_indices = @transform_6, window_bounds = array<i64: 8, 4>}, {pipeline_mode = #tpu.pipeline_mode<synchronous>, transform_indices = @transform_7, window_bounds = array<i64: 8, 1>}, {pipeline_mode = #tpu.pipeline_mode<synchronous>, transform_indices = @transform_8, window_bounds = array<i64: 4, 8>}, {pipeline_mode = #tpu.pipeline_mode<synchronous>, transform_indices = @transform_9, window_bounds = array<i64: 8, 4>}, {pipeline_mode = #tpu.pipeline_mode<synchronous>, transform_indices = @transform_10, window_bounds = array<i64: 8, 1>}, {transform_indices = @transform_11, window_bounds = array<i64: 1, 8, 256>}]} {
    %c0 = arith.constant 0 : index
    %c0_0 = arith.constant 0 : index
    %c0_1 = arith.constant 0 : index
    %0 = vector.load %arg1[%c0, %c0_0, %c0_1] : memref<1x4x256xbf16, #tpu.memory_space<vmem>>, vector<1x4x256xbf16>
    %1 = vector.shape_cast %0 : vector<1x4x256xbf16> to vector<4x256xbf16>
    %c0_2 = arith.constant 0 : index
    %c0_3 = arith.constant 0 : index
    %2 = vector.load %arg2[%c0_2, %c0_3] : memref<4x4xbf16, #tpu.memory_space<vmem>>, vector<4x4xbf16>
    %cst = arith.constant dense<0.000000e+00> : vector<4x256xf32>
    %3 = tpu.matmul %2, %1, %cst {dimension_numbers = #tpu.dot_dimension_numbers<[1], [0], [0], [1], [0, 0, 1, 1], [], []>} : vector<4x4xbf16>, vector<4x256xbf16>, vector<4x256xf32> -> vector<4x256xf32>
    %c0_4 = arith.constant 0 : index
    %c0_5 = arith.constant 0 : index
    %4 = vector.load %arg3[%c0_4, %c0_5] : memref<4x1xf32, #tpu.memory_space<vmem>>, vector<4x1xf32>
    %5 = vector.broadcast %4 : vector<4x1xf32> to vector<4x256xf32>
    %6 = arith.addf %3, %5 : vector<4x256xf32>
    %cst_6 = arith.constant 0.000000e+00 : f32
    %cst_7 = arith.constant 6.000000e+00 : f32
    %7 = vector.broadcast %cst_6 : f32 to vector<4x256xf32>
    %8 = arith.maximumf %7, %6 : vector<4x256xf32>
    %9 = vector.broadcast %cst_7 : f32 to vector<4x256xf32>
    %10 = arith.minimumf %9, %8 : vector<4x256xf32>
    %c4 = arith.constant 4 : index
    %c0_8 = arith.constant 0 : index
    %c0_9 = arith.constant 0 : index
    %11 = vector.load %arg4[%c4, %c0_8, %c0_9] : memref<9x4x1xf32, #tpu.memory_space<vmem>>, vector<1x4x1xf32>
    %12 = vector.shape_cast %11 : vector<1x4x1xf32> to vector<4x1xf32>
    %13 = vector.broadcast %12 : vector<4x1xf32> to vector<4x256xf32>
    %14 = arith.mulf %13, %10 : vector<4x256xf32>
    %c17_i32 = arith.constant 17 : i32
    %15 = tpu.dynamic_rotate %10 by %c17_i32 dim 1 : vector<4x256xf32>, i32 -> vector<4x256xf32>
    %c0_10 = arith.constant 0 : index
    %c0_11 = arith.constant 0 : index
    %c0_12 = arith.constant 0 : index
    %16 = vector.load %arg4[%c0_10, %c0_11, %c0_12] : memref<9x4x1xf32, #tpu.memory_space<vmem>>, vector<1x4x1xf32>
    %17 = vector.shape_cast %16 : vector<1x4x1xf32> to vector<4x1xf32>
    %c0_13 = arith.constant 0 : index
    %c0_14 = arith.constant 0 : index
    %c0_15 = arith.constant 0 : index
    %18 = vector.load %arg6[%c0_13, %c0_14, %c0_15] : memref<9x1x256xf32, #tpu.memory_space<vmem>>, vector<1x1x256xf32>
    %19 = vector.shape_cast %18 : vector<1x1x256xf32> to vector<1x256xf32>
    %20 = vector.broadcast %19 : vector<1x256xf32> to vector<4x256xf32>
    %21 = arith.mulf %15, %20 : vector<4x256xf32>
    %22 = vector.broadcast %17 : vector<4x1xf32> to vector<4x256xf32>
    %23 = arith.mulf %22, %21 : vector<4x256xf32>
    %24 = arith.addf %14, %23 : vector<4x256xf32>
    %c16_i32 = arith.constant 16 : i32
    %25 = tpu.dynamic_rotate %10 by %c16_i32 dim 1 : vector<4x256xf32>, i32 -> vector<4x256xf32>
    %c1 = arith.constant 1 : index
    %c0_16 = arith.constant 0 : index
    %c0_17 = arith.constant 0 : index
    %26 = vector.load %arg4[%c1, %c0_16, %c0_17] : memref<9x4x1xf32, #tpu.memory_space<vmem>>, vector<1x4x1xf32>
    %27 = vector.shape_cast %26 : vector<1x4x1xf32> to vector<4x1xf32>
    %c1_18 = arith.constant 1 : index
    %c0_19 = arith.constant 0 : index
    %c0_20 = arith.constant 0 : index
    %28 = vector.load %arg6[%c1_18, %c0_19, %c0_20] : memref<9x1x256xf32, #tpu.memory_space<vmem>>, vector<1x1x256xf32>
    %29 = vector.shape_cast %28 : vector<1x1x256xf32> to vector<1x256xf32>
    %30 = vector.broadcast %29 : vector<1x256xf32> to vector<4x256xf32>
    %31 = arith.mulf %25, %30 : vector<4x256xf32>
    %32 = vector.broadcast %27 : vector<4x1xf32> to vector<4x256xf32>
    %33 = arith.mulf %32, %31 : vector<4x256xf32>
    %34 = arith.addf %24, %33 : vector<4x256xf32>
    %c15_i32 = arith.constant 15 : i32
    %35 = tpu.dynamic_rotate %10 by %c15_i32 dim 1 : vector<4x256xf32>, i32 -> vector<4x256xf32>
    %c2 = arith.constant 2 : index
    %c0_21 = arith.constant 0 : index
    %c0_22 = arith.constant 0 : index
    %36 = vector.load %arg4[%c2, %c0_21, %c0_22] : memref<9x4x1xf32, #tpu.memory_space<vmem>>, vector<1x4x1xf32>
    %37 = vector.shape_cast %36 : vector<1x4x1xf32> to vector<4x1xf32>
    %c2_23 = arith.constant 2 : index
    %c0_24 = arith.constant 0 : index
    %c0_25 = arith.constant 0 : index
    %38 = vector.load %arg6[%c2_23, %c0_24, %c0_25] : memref<9x1x256xf32, #tpu.memory_space<vmem>>, vector<1x1x256xf32>
    %39 = vector.shape_cast %38 : vector<1x1x256xf32> to vector<1x256xf32>
    %40 = vector.broadcast %39 : vector<1x256xf32> to vector<4x256xf32>
    %41 = arith.mulf %35, %40 : vector<4x256xf32>
    %42 = vector.broadcast %37 : vector<4x1xf32> to vector<4x256xf32>
    %43 = arith.mulf %42, %41 : vector<4x256xf32>
    %44 = arith.addf %34, %43 : vector<4x256xf32>
    %c1_i32 = arith.constant 1 : i32
    %45 = tpu.dynamic_rotate %10 by %c1_i32 dim 1 : vector<4x256xf32>, i32 -> vector<4x256xf32>
    %c3 = arith.constant 3 : index
    %c0_26 = arith.constant 0 : index
    %c0_27 = arith.constant 0 : index
    %46 = vector.load %arg4[%c3, %c0_26, %c0_27] : memref<9x4x1xf32, #tpu.memory_space<vmem>>, vector<1x4x1xf32>
    %47 = vector.shape_cast %46 : vector<1x4x1xf32> to vector<4x1xf32>
    %c3_28 = arith.constant 3 : index
    %c0_29 = arith.constant 0 : index
    %c0_30 = arith.constant 0 : index
    %48 = vector.load %arg6[%c3_28, %c0_29, %c0_30] : memref<9x1x256xf32, #tpu.memory_space<vmem>>, vector<1x1x256xf32>
    %49 = vector.shape_cast %48 : vector<1x1x256xf32> to vector<1x256xf32>
    %50 = vector.broadcast %49 : vector<1x256xf32> to vector<4x256xf32>
    %51 = arith.mulf %45, %50 : vector<4x256xf32>
    %52 = vector.broadcast %47 : vector<4x1xf32> to vector<4x256xf32>
    %53 = arith.mulf %52, %51 : vector<4x256xf32>
    %54 = arith.addf %44, %53 : vector<4x256xf32>
    %c255_i32 = arith.constant 255 : i32
    %55 = tpu.dynamic_rotate %10 by %c255_i32 dim 1 : vector<4x256xf32>, i32 -> vector<4x256xf32>
    %c5 = arith.constant 5 : index
    %c0_31 = arith.constant 0 : index
    %c0_32 = arith.constant 0 : index
    %56 = vector.load %arg4[%c5, %c0_31, %c0_32] : memref<9x4x1xf32, #tpu.memory_space<vmem>>, vector<1x4x1xf32>
    %57 = vector.shape_cast %56 : vector<1x4x1xf32> to vector<4x1xf32>
    %c5_33 = arith.constant 5 : index
    %c0_34 = arith.constant 0 : index
    %c0_35 = arith.constant 0 : index
    %58 = vector.load %arg6[%c5_33, %c0_34, %c0_35] : memref<9x1x256xf32, #tpu.memory_space<vmem>>, vector<1x1x256xf32>
    %59 = vector.shape_cast %58 : vector<1x1x256xf32> to vector<1x256xf32>
    %60 = vector.broadcast %59 : vector<1x256xf32> to vector<4x256xf32>
    %61 = arith.mulf %55, %60 : vector<4x256xf32>
    %62 = vector.broadcast %57 : vector<4x1xf32> to vector<4x256xf32>
    %63 = arith.mulf %62, %61 : vector<4x256xf32>
    %64 = arith.addf %54, %63 : vector<4x256xf32>
    %c241_i32 = arith.constant 241 : i32
    %65 = tpu.dynamic_rotate %10 by %c241_i32 dim 1 : vector<4x256xf32>, i32 -> vector<4x256xf32>
    %c6 = arith.constant 6 : index
    %c0_36 = arith.constant 0 : index
    %c0_37 = arith.constant 0 : index
    %66 = vector.load %arg4[%c6, %c0_36, %c0_37] : memref<9x4x1xf32, #tpu.memory_space<vmem>>, vector<1x4x1xf32>
    %67 = vector.shape_cast %66 : vector<1x4x1xf32> to vector<4x1xf32>
    %c6_38 = arith.constant 6 : index
    %c0_39 = arith.constant 0 : index
    %c0_40 = arith.constant 0 : index
    %68 = vector.load %arg6[%c6_38, %c0_39, %c0_40] : memref<9x1x256xf32, #tpu.memory_space<vmem>>, vector<1x1x256xf32>
    %69 = vector.shape_cast %68 : vector<1x1x256xf32> to vector<1x256xf32>
    %70 = vector.broadcast %69 : vector<1x256xf32> to vector<4x256xf32>
    %71 = arith.mulf %65, %70 : vector<4x256xf32>
    %72 = vector.broadcast %67 : vector<4x1xf32> to vector<4x256xf32>
    %73 = arith.mulf %72, %71 : vector<4x256xf32>
    %74 = arith.addf %64, %73 : vector<4x256xf32>
    %c240_i32 = arith.constant 240 : i32
    %75 = tpu.dynamic_rotate %10 by %c240_i32 dim 1 : vector<4x256xf32>, i32 -> vector<4x256xf32>
    %c7 = arith.constant 7 : index
    %c0_41 = arith.constant 0 : index
    %c0_42 = arith.constant 0 : index
    %76 = vector.load %arg4[%c7, %c0_41, %c0_42] : memref<9x4x1xf32, #tpu.memory_space<vmem>>, vector<1x4x1xf32>
    %77 = vector.shape_cast %76 : vector<1x4x1xf32> to vector<4x1xf32>
    %c7_43 = arith.constant 7 : index
    %c0_44 = arith.constant 0 : index
    %c0_45 = arith.constant 0 : index
    %78 = vector.load %arg6[%c7_43, %c0_44, %c0_45] : memref<9x1x256xf32, #tpu.memory_space<vmem>>, vector<1x1x256xf32>
    %79 = vector.shape_cast %78 : vector<1x1x256xf32> to vector<1x256xf32>
    %80 = vector.broadcast %79 : vector<1x256xf32> to vector<4x256xf32>
    %81 = arith.mulf %75, %80 : vector<4x256xf32>
    %82 = vector.broadcast %77 : vector<4x1xf32> to vector<4x256xf32>
    %83 = arith.mulf %82, %81 : vector<4x256xf32>
    %84 = arith.addf %74, %83 : vector<4x256xf32>
    %c239_i32 = arith.constant 239 : i32
    %85 = tpu.dynamic_rotate %10 by %c239_i32 dim 1 : vector<4x256xf32>, i32 -> vector<4x256xf32>
    %c8 = arith.constant 8 : index
    %c0_46 = arith.constant 0 : index
    %c0_47 = arith.constant 0 : index
    %86 = vector.load %arg4[%c8, %c0_46, %c0_47] : memref<9x4x1xf32, #tpu.memory_space<vmem>>, vector<1x4x1xf32>
    %87 = vector.shape_cast %86 : vector<1x4x1xf32> to vector<4x1xf32>
    %c8_48 = arith.constant 8 : index
    %c0_49 = arith.constant 0 : index
    %c0_50 = arith.constant 0 : index
    %88 = vector.load %arg6[%c8_48, %c0_49, %c0_50] : memref<9x1x256xf32, #tpu.memory_space<vmem>>, vector<1x1x256xf32>
    %89 = vector.shape_cast %88 : vector<1x1x256xf32> to vector<1x256xf32>
    %90 = vector.broadcast %89 : vector<1x256xf32> to vector<4x256xf32>
    %91 = arith.mulf %85, %90 : vector<4x256xf32>
    %92 = vector.broadcast %87 : vector<4x1xf32> to vector<4x256xf32>
    %93 = arith.mulf %92, %91 : vector<4x256xf32>
    %94 = arith.addf %84, %93 : vector<4x256xf32>
    %c0_51 = arith.constant 0 : index
    %c0_52 = arith.constant 0 : index
    %95 = vector.load %arg5[%c0_51, %c0_52] : memref<4x1xf32, #tpu.memory_space<vmem>>, vector<4x1xf32>
    %96 = vector.broadcast %95 : vector<4x1xf32> to vector<4x256xf32>
    %97 = arith.addf %94, %96 : vector<4x256xf32>
    %cst_53 = arith.constant 0.000000e+00 : f32
    %cst_54 = arith.constant 6.000000e+00 : f32
    %98 = vector.broadcast %cst_53 : f32 to vector<4x256xf32>
    %99 = arith.maximumf %98, %97 : vector<4x256xf32>
    %100 = vector.broadcast %cst_54 : f32 to vector<4x256xf32>
    %101 = arith.minimumf %100, %99 : vector<4x256xf32>
    %cst_55 = arith.constant dense<0.000000e+00> : vector<4xf32>
    %102 = vector.multi_reduction <add>, %101, %cst_55 [1] : vector<4x256xf32> to vector<4xf32>
    %103 = vector.shape_cast %102 : vector<4xf32> to vector<4x1xf32>
    %cst_56 = arith.constant 3.906250e-03 : f32
    %104 = vector.broadcast %cst_56 : f32 to vector<4x1xf32>
    %105 = arith.mulf %103, %104 : vector<4x1xf32>
    %c0_57 = arith.constant 0 : index
    %c0_58 = arith.constant 0 : index
    %106 = vector.load %arg7[%c0_57, %c0_58] : memref<8x4xf32, #tpu.memory_space<vmem>>, vector<8x4xf32>
    %cst_59 = arith.constant dense<0.000000e+00> : vector<8x1xf32>
    %107 = tpu.matmul %106, %105, %cst_59 {dimension_numbers = #tpu.dot_dimension_numbers<[1], [0], [0], [1], [0, 0, 1, 1], [], []>, precision = #tpu.contract_precision<fp32>} : vector<8x4xf32>, vector<4x1xf32>, vector<8x1xf32> -> vector<8x1xf32>
    %c0_60 = arith.constant 0 : index
    %c0_61 = arith.constant 0 : index
    %108 = vector.load %arg8[%c0_60, %c0_61] : memref<8x1xf32, #tpu.memory_space<vmem>>, vector<8x1xf32>
    %109 = arith.addf %107, %108 : vector<8x1xf32>
    %cst_62 = arith.constant 0.000000e+00 : f32
    %110 = vector.broadcast %cst_62 : f32 to vector<8x1xf32>
    %111 = arith.maximumf %109, %110 : vector<8x1xf32>
    %c0_63 = arith.constant 0 : index
    %c0_64 = arith.constant 0 : index
    %112 = vector.load %arg9[%c0_63, %c0_64] : memref<4x8xf32, #tpu.memory_space<vmem>>, vector<4x8xf32>
    %cst_65 = arith.constant dense<0.000000e+00> : vector<4x1xf32>
    %113 = tpu.matmul %112, %111, %cst_65 {dimension_numbers = #tpu.dot_dimension_numbers<[1], [0], [0], [1], [0, 0, 1, 1], [], []>, precision = #tpu.contract_precision<fp32>} : vector<4x8xf32>, vector<8x1xf32>, vector<4x1xf32> -> vector<4x1xf32>
    %cst_66 = arith.constant 0.166666672 : f32
    %114 = vector.broadcast %cst_66 : f32 to vector<4x1xf32>
    %115 = arith.mulf %113, %114 : vector<4x1xf32>
    %cst_67 = arith.constant 5.000000e-01 : f32
    %116 = vector.broadcast %cst_67 : f32 to vector<4x1xf32>
    %117 = arith.addf %115, %116 : vector<4x1xf32>
    %cst_68 = arith.constant 0.000000e+00 : f32
    %cst_69 = arith.constant 1.000000e+00 : f32
    %118 = vector.broadcast %cst_68 : f32 to vector<4x1xf32>
    %119 = arith.maximumf %118, %117 : vector<4x1xf32>
    %120 = vector.broadcast %cst_69 : f32 to vector<4x1xf32>
    %121 = arith.minimumf %120, %119 : vector<4x1xf32>
    %122 = vector.broadcast %121 : vector<4x1xf32> to vector<4x256xf32>
    %123 = arith.mulf %101, %122 : vector<4x256xf32>
    %c0_70 = arith.constant 0 : index
    %c0_71 = arith.constant 0 : index
    %124 = vector.load %arg10[%c0_70, %c0_71] : memref<8x4xbf16, #tpu.memory_space<vmem>>, vector<8x4xbf16>
    %125 = arith.truncf %123 : vector<4x256xf32> to vector<4x256xbf16>
    %cst_72 = arith.constant dense<0.000000e+00> : vector<8x256xf32>
    %126 = tpu.matmul %124, %125, %cst_72 {dimension_numbers = #tpu.dot_dimension_numbers<[1], [0], [0], [1], [0, 0, 1, 1], [], []>} : vector<8x4xbf16>, vector<4x256xbf16>, vector<8x256xf32> -> vector<8x256xf32>
    %c0_73 = arith.constant 0 : index
    %c0_74 = arith.constant 0 : index
    %127 = vector.load %arg11[%c0_73, %c0_74] : memref<8x1xf32, #tpu.memory_space<vmem>>, vector<8x1xf32>
    %128 = vector.broadcast %127 : vector<8x1xf32> to vector<8x256xf32>
    %129 = arith.addf %126, %128 : vector<8x256xf32>
    %cst_75 = arith.constant 0.000000e+00 : f32
    %cst_76 = arith.constant 6.000000e+00 : f32
    %130 = vector.broadcast %cst_75 : f32 to vector<8x256xf32>
    %131 = arith.maximumf %130, %129 : vector<8x256xf32>
    %132 = vector.broadcast %cst_76 : f32 to vector<8x256xf32>
    %133 = arith.minimumf %132, %131 : vector<8x256xf32>
    %c0_77 = arith.constant 0 : index
    %c0_78 = arith.constant 0 : index
    %c0_79 = arith.constant 0 : index
    %134 = vector.load %arg12[%c0_77, %c0_78, %c0_79] : memref<1x8x256xf32, #tpu.memory_space<vmem>>, vector<1x8x256xf32>
    %135 = vector.shape_cast %134 : vector<1x8x256xf32> to vector<8x256xf32>
    %136 = vector.shape_cast %133 : vector<8x256xf32> to vector<1x8x256xf32>
    tpu.vector_store %arg12[%c0_77, %c0_78, %c0_79], %136 {strides = array<i32>} : memref<1x8x256xf32, #tpu.memory_space<vmem>>, vector<1x8x256xf32>,
    return
  }
  func.func @transform_0(%arg0: i32) -> (i32, i32, i32) {
    %c0_i32 = arith.constant 0 : i32
    %c0_i32_0 = arith.constant 0 : i32
    %c0_i32_1 = arith.constant 0 : i32
    return %arg0, %c0_i32, %c0_i32_0 : i32, i32, i32
  }
  func.func @transform_1(%arg0: i32) -> (i32, i32) {
    %c0_i32 = arith.constant 0 : i32
    %c0_i32_0 = arith.constant 0 : i32
    %c0_i32_1 = arith.constant 0 : i32
    return %c0_i32, %c0_i32_0 : i32, i32
  }
  func.func @transform_2(%arg0: i32) -> (i32, i32) {
    %c0_i32 = arith.constant 0 : i32
    %c0_i32_0 = arith.constant 0 : i32
    %c0_i32_1 = arith.constant 0 : i32
    return %c0_i32, %c0_i32_0 : i32, i32
  }
  func.func @transform_3(%arg0: i32) -> (i32, i32, i32) {
    %c0_i32 = arith.constant 0 : i32
    %c0_i32_0 = arith.constant 0 : i32
    %c0_i32_1 = arith.constant 0 : i32
    %c0_i32_2 = arith.constant 0 : i32
    return %c0_i32, %c0_i32_0, %c0_i32_1 : i32, i32, i32
  }
  func.func @transform_4(%arg0: i32) -> (i32, i32) {
    %c0_i32 = arith.constant 0 : i32
    %c0_i32_0 = arith.constant 0 : i32
    %c0_i32_1 = arith.constant 0 : i32
    return %c0_i32, %c0_i32_0 : i32, i32
  }
  func.func @transform_5(%arg0: i32) -> (i32, i32, i32) {
    %c0_i32 = arith.constant 0 : i32
    %c0_i32_0 = arith.constant 0 : i32
    %c0_i32_1 = arith.constant 0 : i32
    %c0_i32_2 = arith.constant 0 : i32
    return %c0_i32, %c0_i32_0, %c0_i32_1 : i32, i32, i32
  }
  func.func @transform_6(%arg0: i32) -> (i32, i32) {
    %c0_i32 = arith.constant 0 : i32
    %c0_i32_0 = arith.constant 0 : i32
    %c0_i32_1 = arith.constant 0 : i32
    return %c0_i32, %c0_i32_0 : i32, i32
  }
  func.func @transform_7(%arg0: i32) -> (i32, i32) {
    %c0_i32 = arith.constant 0 : i32
    %c0_i32_0 = arith.constant 0 : i32
    %c0_i32_1 = arith.constant 0 : i32
    return %c0_i32, %c0_i32_0 : i32, i32
  }
  func.func @transform_8(%arg0: i32) -> (i32, i32) {
    %c0_i32 = arith.constant 0 : i32
    %c0_i32_0 = arith.constant 0 : i32
    %c0_i32_1 = arith.constant 0 : i32
    return %c0_i32, %c0_i32_0 : i32, i32
  }
  func.func @transform_9(%arg0: i32) -> (i32, i32) {
    %c0_i32 = arith.constant 0 : i32
    %c0_i32_0 = arith.constant 0 : i32
    %c0_i32_1 = arith.constant 0 : i32
    return %c0_i32, %c0_i32_0 : i32, i32
  }
  func.func @transform_10(%arg0: i32) -> (i32, i32) {
    %c0_i32 = arith.constant 0 : i32
    %c0_i32_0 = arith.constant 0 : i32
    %c0_i32_1 = arith.constant 0 : i32
    return %c0_i32, %c0_i32_0 : i32, i32
  }
  func.func @transform_11(%arg0: i32) -> (i32, i32, i32) {
    %c0_i32 = arith.constant 0 : i32
    %c0_i32_0 = arith.constant 0 : i32
    %c0_i32_1 = arith.constant 0 : i32
    return %arg0, %c0_i32, %c0_i32_0 : i32, i32, i32
  }
}

</mosaic_0001>

<bundles_post_ra>
// kernel: tpu_custom_call.1
= control target key start
LH: loop header
LB: loop body
LE: loop exit
PB: predicated region body
PF: predicated region fallthrough
CT: control target
= control target key end

     0   :  { %s1574_s0 = inlined_call_operand.vmem [shape: bf16[2,4,256], index: 0, kind: input, shape index: {}]   ;;  %s1575_s1 = inlined_call_operand.vmem [shape: bf16[4,4], index: 1, kind: input, shape index: {}]   ;;  %s1576_s2 = inlined_call_operand.vmem [shape: f32[4,1], index: 2, kind: input, shape index: {}]   ;;  %s1577_s3 = inlined_call_operand.vmem [shape: f32[9,4,1], index: 3, kind: input, shape index: {}]   ;;  %s1578_s4 = inlined_call_operand.vmem [shape: f32[4,1], index: 4, kind: input, shape index: {}]   ;;  %s1579_s5 = inlined_call_operand.vmem [shape: f32[9,1,256], index: 5, kind: input, shape index: {}]   ;;  %s1580_s6 = inlined_call_operand.vmem [shape: f32[8,4], index: 6, kind: input, shape index: {}]   ;;  %s1581_s7 = inlined_call_operand.vmem [shape: f32[8,1], index: 7, kind: input, shape index: {}]   ;;  %s1582_s8 = inlined_call_operand.vmem [shape: f32[4,8], index: 8, kind: input, shape index: {}]   ;;  %s1583_s9 = inlined_call_operand.vmem [shape: bf16[8,4], index: 9, kind: input, shape index: {}]   ;;  %s1584_s10 = inlined_call_operand.vmem [shape: f32[8,1], index: 10, kind: input, shape index: {}]   ;;  %s1585_s11 = inlined_call_operand.hbm [shape: f32[2,8,256], index: 11, kind: output, shape index: {}]  }
   0x1   :  { %1586 = sst [smem:[#allocation5_spill]] %s1574_s0 }
   0x2   :  { %16 = vsyncpa [#allocation3], 0 }
   0x3   :  { %18 = vsyncpa [#allocation3 + $0x1], 0  ;;  %s1341_s17 = smov 0   ;;  %s1343_s18 = smov 0  }
   0x4   :  { %s1345_s19 = smov 0   ;;  %s1347_s20 = smov 0  }
   0x5 LB: > { %s1362_s21 = sadd.s32 4294967295, %s1270_s20   ;;  %s1124_s22 = sadd.s32 4294967294, %s1270_s20   ;;  %s1270_s20 = sphi %s1347_s20, %s1593_s20   ;;  %s1266_s19 = sphi %s1345_s19, %s1592_s19   ;;  %s1262_s18 = sphi %s1343_s18, %s1591_s18   ;;  %s1258_s17 = sphi %s1341_s17, %s1590_s17  }
   0x6   : > { %s1366_s23 = sadd.s32 1, %s1270_s20   ;;  %s267_s24 = sadd.s32 1, %s1266_s19 }
   0x7   : > { %s264_s25 = ssub.s32 %s1270_s20, %s1366_s23  ;;  %p277_p0 = scmp.ne.s32.totalorder %s1266_s19, %s1262_s18 }
   0x8   : > { %p265_p1 = scmp.eq.s32.totalorder %s264_s25, 0  ;;  %p278_p2 = scmp.eq.s32.totalorder %s1362_s21, 1 }
   0x9   : > { %p283_p3 = scmp.ne.s32.totalorder %s1262_s18, %s1258_s17  ;;  %p284_p4 = scmp.eq.s32.totalorder %s1124_s22, 1 }
   0xa   : > { %s1377_s26 = scalar_select %p265_p1, %s1266_s19, %s267_s24  }
   0xb   : > { %p1379_p5 = por %p278_p2, %p277_p0  ;;  %p1383_p6 = por %p284_p4, %p283_p3 }
   0xc   : > { %p1127_p7 = scmp.ge.s32.totalorder %s1270_s20, 1  ;;  %p340_p8 = scmp.lt.s32.totalorder %s1270_s20, 3 }
   0xe   : > { %p341_p9 = pnand %p1127_p7, %p340_p8 }
   0xf   : > { %p380_p10 = scmp.lt.s32.totalorder (!%p341_p9), %s1362_s21, 1  ;;  %s1589_s0 = sld [smem:[#allocation5_spill]] (!%p341_p9) }
  0x10   : > { %344 = sbr.rel (%p341_p9) target bundleno = 1052 (0x41c), region = 64  ;;  %s1273_s30 = smov (!%p341_p9), 16  }
  0x11   : > { %s1275_s15 = smov (!%p341_p9), 15   ;;  %s1276_s24 = smov (!%p341_p9), 1  }
  0x12   : > { %s1277_s25 = smov (!%p341_p9), 127   ;;  %s1278_s29 = smov (!%p341_p9), 113  }
  0x13   : > { %s1228_s22 = scalar_lea.hbm (!%p341_p9), %s1585_s11, 32 }
  0x15   : > { %v388_v0 = vld [vmem:[%s1576_s2] sm:$0xf]  ;;  %v1272_v1 = vmov 0   ;;  %s381_s12 = scalar_select %p380_p10, %s1362_s21, 1  ;;  %v1133_v4 = vld [vmem:[%s1577_s3 + $0x10] sm:$0xf]  ;;  %v450_v43 = vlaneseq }
  0x16   : > { %1205 = vset.pattern.permute.xlu0 %v1272_v1  ;;  %1206 = vset.pattern.permute.xlu2 %v1272_v1  ;;  %v455_v3 = vld [vmem:[%s1577_s3] sm:$0xf]  ;;  %vm402_vm0 = vcmask 1041408   ;;  %v1134_v9 = vld [vmem:[%s1577_s3 + $0x4] sm:$0xf]  ;;  %vm398_vm1 = vcmask 31744  }
  0x17   : > { %391 = vperm.xlu0 %1205, %v388_v0   ;;  %1207 = vset.pattern.permute.xlu1 %v1272_v1  ;;  %s1155_s13 = sshll.u32 %s381_s12, 2  ;;  %v387_v10 = vld [vmem:[%s1575_s1] sm:$0x3]  ;;  %v1136_v11 = vld [vmem:[%s1577_s3 + $0x8] sm:$0xf]  ;;  %s1274_s12 = smov 17  }
  0x18   : > { %s384_s16 = scalar_lea.vmem %s1589_s0, %s1155_s13  ;;  %441 = vperm.xlu2 %1206, %v1133_v4   ;;  %v1138_v12 = vld [vmem:[%s1577_s3 + $0xc] sm:$0xf]  ;;  %v1140_v13 = vld [vmem:[%s1577_s3 + $0x14] sm:$0xf]  ;;  %v1142_v25 = vld [vmem:[%s1577_s3 + $0x18] sm:$0xf] }
  0x19   : > { %v386_v2 = vld [vmem:[%s384_s16] sm:$0xf]  ;;  %v1144_v26 = vld [vmem:[%s1577_s3 + $0x1c] sm:$0xf]  ;;  %v1465_v45 = vand.u32 127, %v450_v43  ;;  %vm674_vm10 = vcmask 1043456  }
  0x1a   : > { %395 = vst [vmem:[#allocation1] ss:$4 sm:$0xff] %v386_v2  ;;  %v662_v27 = vld [vmem:[%s1578_s4] sm:$0xf]  ;;  %v1137_v58 = vld [vmem:[%s1579_s5 + $0x4] sm:$0x3] }
  0x1b   : > { %v1001_v28 = vld [vmem:[%s1584_s10] sm:$0xff]  ;;  %vm452_vm2 = vcmp.lt.s32.totalorder %v1465_v45, 17  ;;  %vm477_vm3 = vcmp.lt.s32.totalorder %v1465_v45, 16  ;;  %vm504_vm4 = vcmp.lt.s32.totalorder %v1465_v45, 15  ;;  %v512_v1 = vperm.slane %v1137_v58, 0  ;;  %s377_s13 = sand.u32 1, %s1262_s18  }
  0x1c   : > { %v1146_v29 = vld [vmem:[%s1577_s3 + $0x20] sm:$0xf]  ;;  %v1139_v63 = vld [vmem:[%s1579_s5 + $0x6] sm:$0x3]  ;;  %v513_v2 = vperm.slane %v1137_v58, 1  ;;  %vm531_vm5 = vcmp.lt.s32.totalorder %v1465_v45, 1 }
  0x1d   : > { %v456_v47 = vld [vmem:[%s1579_s5] sm:$0x3]  ;;  %v1135_v54 = vld [vmem:[%s1579_s5 + $0x2] sm:$0x3]  ;;  %vm558_vm6 = vcmp.lt.s32.totalorder %v1465_v45, 127  ;;  %vm585_vm7 = vcmp.lt.s32.totalorder %v1465_v45, 113 }
  0x1e   : > { %v458_v49 = vperm.slane %v456_v47, 0  ;;  %v459_v50 = vperm.slane %v456_v47, 1  ;;  %v485_v59 = vperm.slane %v1135_v54, 0  ;;  %v486_v60 = vperm.slane %v1135_v54, 1  ;;  %s1128_s14 = sshll.u32 %s377_s13, 4 }
  0x1f   : > { %466 = vperm.xlu0 %1205, %v455_v3   ;;  %v1141_v3 = vld [vmem:[%s1579_s5 + $0xa] sm:$0x3]  ;;  %vm612_vm8 = vcmp.lt.s32.totalorder %v1465_v45, 112  ;;  %vm639_vm9 = vcmp.lt.s32.totalorder %v1465_v45, 111  ;;  %vm837_vm11 = vcmask 64512  }
  0x21   : > { %v396_v5 = vld.sshfl [vmem:[#allocation1] sm:$0xff pattern:$0x73625140]  ;;  %v397_v6 = vld.sshfl [vmem:[#allocation1 + $0x8] sm:$0xff pattern:$0x73625140] }
  0x22   : > { %v403_v7 = vsel %vm402_vm0, %v396_v5, 0  ;;  %v405_v8 = vsel %vm402_vm0, %v397_v6, 0 }
  0x23   : > { %414 = vmatpush.bf16.msra.mxu0 %v403_v7  ;;  %427 = vmatpush.bf16.msra.mxu1 %v405_v8 }
  0x26   : > { %1131 = vmatmul.msk.bf16.vlgmr.msra.gmra.mxu0 %vm398_vm1, %v387_v10  ;;  %1132 = vmatmul.msk.bf16.vlgmr.msra.gmra.mxu1 %vm398_vm1, %v387_v10 }
  0x27   : > { %493 = vperm.xlu0 %1205, %v1134_v9  }
  0x2f   : > { %520 = vperm.xlu0 %1205, %v1136_v11   ;;  %v539_v11 = vperm.slane %v1139_v63, 0 }
  0x37   : > { %547 = vperm.xlu0 %1205, %v1138_v12   ;;  %v1143_v12 = vld [vmem:[%s1579_s5 + $0xc] sm:$0x3] }
  0x3f   : > { %574 = vperm.xlu0 %1205, %v1140_v13   ;;  %v540_v13 = vperm.slane %v1139_v63, 1 }
  0x72   : > { %v442_v31 = vpop.permute.xlu2 %441 }
  0x89   : > { %v392_v14 = vpop.permute.xlu0 %391 }
  0x91   : > { %v467_v30 = vpop.permute.xlu0 %466 }
  0x99   : > { %v1457_v32 = vpop.permute.xlu0 %493 }
  0xa1   : > { %v1459_v35 = vpop.permute.xlu0 %520 }
  0xa3   : > { %v416_v15 = vpop.f32.mrf.mxu0  ;;  %v429_v16 = vpop.f32.mrf.mxu1 }
  0xa4   : > { %v417_v17 = vadd.f32 %v416_v15, %v392_v14  ;;  %v430_v18 = vadd.f32 %v429_v16, %v392_v14  ;;  %v566_v14 = vperm.slane %v1141_v3, 0  ;;  %v567_v15 = vperm.slane %v1141_v3, 1 }
  0xa6   : > { %v433_v19 = vmax.f32 %v417_v17, 0.0  ;;  %v434_v20 = vmax.f32 %v430_v18, 0.0 }
  0xa8   : > { %v1422_v21 = vmin.f32 %v433_v19, 6.0  ;;  %v1424_v22 = vmin.f32 %v434_v20, 6.0 }
  0xa9   : > { %v1461_v39 = vpop.permute.xlu0 %547 }
  0xaa   : > { %475 = vrot.lane.b32.xlu2 %v1424_v22, %s1273_s30  ;;  %448 = vrot.lane.b32.xlu1 %v1424_v22, %s1274_s12  ;;  %v444_v0 = vmul.f32 %v442_v31, %v1422_v21  ;;  %v445_v8 = vmul.f32 %v442_v31, %v1424_v22 }
  0xab   : > { %446 = vrot.lane.b32.xlu0 %v1422_v21, %s1274_s12  ;;  %v418_v23 = vpop.f32.mrf.mxu0  ;;  %v431_v24 = vpop.f32.mrf.mxu1  ;;  %s1280_s12 = smov 111  }
  0xac   : > { %v593_v24 = vperm.slane %v1143_v12, 0 }
  0xb1   : > { %v1463_v42 = vpop.permute.xlu0 %574 }
  0xb2   : > { %502 = vrot.lane.b32.xlu2 %v1424_v22, %s1275_s15  ;;  %473 = vrot.lane.b32.xlu1 %v1422_v21, %s1273_s30  ;;  %s1279_s30 = smov 112  }
  0xb3   : > { %601 = vperm.xlu0 %1205, %v1142_v25  }
  0xba   : > { %529 = vrot.lane.b32.xlu2 %v1424_v22, %s1276_s24  ;;  %500 = vrot.lane.b32.xlu1 %v1422_v21, %s1275_s15  ;;  %s1156_s15 = sshll.u32 %s1362_s21, 4  ;;  %s1049_s21 = scalar_lea.sflag [#allocation3], %s377_s13 }
  0xbb   : > { %628 = vperm.xlu0 %1205, %v1144_v26  }
  0xc2   : > { %556 = vrot.lane.b32.xlu2 %v1424_v22, %s1277_s25  ;;  %527 = vrot.lane.b32.xlu1 %v1422_v21, %s1276_s24  ;;  %s1060_s24 = scalar_lea.hbm %s1585_s11, %s1156_s15 }
  0xca   : > { %583 = vrot.lane.b32.xlu2 %v1424_v22, %s1278_s29  ;;  %554 = vrot.lane.b32.xlu1 %v1422_v21, %s1277_s25  ;;  %s379_s25 = scalar_lea.vmem [#allocation2], %s1128_s14 }
  0xd2   : > { %610 = vrot.lane.b32.xlu2 %v1424_v22, %s1279_s30  ;;  %581 = vrot.lane.b32.xlu1 %v1422_v21, %s1278_s29  ;;  %s1062_s29 = sshll.u32 %s379_s25, 4  ;;  %s1063_s29 = int_to_ptr.vmem [resolvable:$true] %s1062_s29 }
  0xda   : > { %637 = vrot.lane.b32.xlu2 %v1424_v22, %s1280_s12  ;;  %608 = vrot.lane.b32.xlu1 %v1422_v21, %s1279_s30  ;;  %s1064_s30 = sshll.u32 %s1060_s24, 4  ;;  %s1065_s30 = int_to_ptr.hbm [resolvable:$true] %s1064_s30 }
  0xe2   : > { %665 = vperm.xlu2 %1206, %v662_v27   ;;  %635 = vrot.lane.b32.xlu1 %v1422_v21, %s1280_s12  ;;  %s1222_s12 = sshra.s32 %s1065_s30, 4  ;;  %s1223_s12 = int_to_ptr.hbm [resolvable:$true] %s1222_s12 }
  0xe3   : > { %s1224_s15 = scalar_lea.hbm %s1223_s12, 16  ;;  %p1229_p0 = scmp.lt.s32.totalorder %s1223_s12, %s1585_s11 }
  0xe4   : > { %p1225_p11 = scmp.ne.s32.totalorder %s1223_s12, %s1224_s15  ;;  %p1230_p1 = scmp.lt.s32.totalorder %s1228_s22, %s1224_s15 }
  0xe6   : > { %p1226_p12 = pnand %p1225_p11, %p1379_p5  ;;  %p1231_p2 = por %p1230_p1, %p1229_p0 }
  0xe8   : > { %p1227_p13 = pneg %p1226_p12 }
  0xea   : > { %1004 = vperm.xlu2 %1206, %v1001_v28   ;;  %655 = vperm.xlu1 %1207, %v1146_v29   ;;  %p1232_p3 = pnand %p1231_p2, %p1227_p13 }
 0x104   : > { %v476_v33 = vpop.permute.xlu2 %475 }
 0x10c   : > { %v503_v36 = vpop.permute.xlu2 %502 }
 0x114   : > { %v530_v40 = vpop.permute.xlu2 %529 }
 0x11c   : > { %v449_v34 = vpop.permute.xlu1 %448  ;;  %v557_v44 = vpop.permute.xlu2 %556 }
 0x11d   : > { %v447_v48 = vpop.permute.xlu0 %446 }
 0x11e   : > { %v453_v51 = vsel %vm452_vm2, %v447_v48, %v449_v34  ;;  %v454_v52 = vsel %vm452_vm2, %v449_v34, %v447_v48  ;;  %v594_v34 = vperm.slane %v1143_v12, 1 }
 0x11f   : > { %v462_v56 = vmul.f32 %v458_v49, %v454_v52  ;;  %v463_v57 = vmul.f32 %v459_v50, %v453_v51 }
 0x121   : > { %v469_v4 = vmul.f32 %v467_v30, %v462_v56  ;;  %v470_v5 = vmul.f32 %v467_v30, %v463_v57  ;;  %v1145_v30 = vld [vmem:[%s1579_s5 + $0xe] sm:$0x3] }
 0x122   : > { %v620_v43 = vperm.slane %v1145_v30, 0  ;;  %v621_v47 = vperm.slane %v1145_v30, 1 }
 0x123   : > { %v471_v22 = vadd.f32 %v469_v4, %v444_v0  ;;  %v472_v23 = vadd.f32 %v470_v5, %v445_v8 }
 0x124   : > { %v474_v37 = vpop.permute.xlu1 %473  ;;  %v584_v53 = vpop.permute.xlu2 %583 }
 0x125   : > { %v478_v61 = vsel %vm477_vm3, %v474_v37, %v476_v33  ;;  %v479_v62 = vsel %vm477_vm3, %v476_v33, %v474_v37  ;;  %v602_v27 = vpop.permute.xlu0 %601 }
 0x126   : > { %v489_v9 = vmul.f32 %v485_v59, %v479_v62  ;;  %v490_v10 = vmul.f32 %v486_v60, %v478_v61 }
 0x128   : > { %v496_v25 = vmul.f32 %v1457_v32, %v489_v9  ;;  %v497_v26 = vmul.f32 %v1457_v32, %v490_v10 }
 0x12c   : > { %v501_v38 = vpop.permute.xlu1 %500  ;;  %v611_v16 = vpop.permute.xlu2 %610 }
 0x12d   : > { %v505_v6 = vsel %vm504_vm4, %v501_v38, %v503_v36  ;;  %v506_v7 = vsel %vm504_vm4, %v503_v36, %v501_v38  ;;  %v629_v3 = vpop.permute.xlu0 %628 }
 0x12e   : > { %v516_v17 = vmul.f32 %v512_v1, %v506_v7  ;;  %v517_v18 = vmul.f32 %v513_v2, %v505_v6 }
 0x130   : > { %v523_v36 = vmul.f32 %v1459_v35, %v516_v17  ;;  %v524_v32 = vmul.f32 %v1459_v35, %v517_v18  ;;  %v1147_v35 = vld [vmem:[%s1579_s5 + $0x10] sm:$0x3] }
 0x131   : > { %v647_v62 = vperm.slane %v1147_v35, 0 }
 0x134   : > { %v528_v41 = vpop.permute.xlu1 %527  ;;  %v638_v61 = vpop.permute.xlu2 %637 }
 0x135   : > { %v532_v19 = vsel %vm531_vm5, %v528_v41, %v530_v40  ;;  %v533_v20 = vsel %vm531_vm5, %v530_v40, %v528_v41 }
 0x136   : > { %v543_v31 = vmul.f32 %v539_v11, %v533_v20  ;;  %v544_v33 = vmul.f32 %v540_v13, %v532_v19 }
 0x138   : > { %v550_v50 = vmul.f32 %v1461_v39, %v543_v31  ;;  %v551_v51 = vmul.f32 %v1461_v39, %v544_v33  ;;  %v648_v39 = vperm.slane %v1147_v35, 1 }
 0x13c   : > { %v555_v46 = vpop.permute.xlu1 %554  ;;  %v666_v19 = vpop.permute.xlu2 %665 }
 0x13d   : > { %v559_v28 = vsel %vm558_vm6, %v555_v46, %v557_v44  ;;  %v560_v29 = vsel %vm558_vm6, %v557_v44, %v555_v46  ;;  %v498_v44 = vadd.f32 %v496_v25, %v471_v22  ;;  %v499_v46 = vadd.f32 %v497_v26, %v472_v23 }
 0x13e   : > { %v570_v40 = vmul.f32 %v566_v14, %v559_v28  ;;  %v571_v41 = vmul.f32 %v567_v15, %v560_v29  ;;  %v681_v29 = vld [vmem:[%s1580_s6] sm:$0xff] }
 0x13f   : > { %v525_v56 = vadd.f32 %v523_v36, %v498_v44  ;;  %v684_v30 = vsel %vm398_vm1, %v681_v29, 0 }
 0x140   : > { %v577_v57 = vmul.f32 %v1463_v42, %v570_v40  ;;  %v578_v58 = vmul.f32 %v1463_v42, %v571_v41  ;;  %v706_v31 = vand.u32 4294901760, %v684_v30 }
 0x141   : > { %v552_v63 = vadd.f32 %v550_v50, %v525_v56 }
 0x142   : > { %v707_v33 = vsub.f32 %v684_v30, %v706_v31  ;;  %v998_v30 = vld [vmem:[%s1583_s9] sm:$0xf] }
 0x143   : > { %v579_v6 = vadd.f32 %v577_v57, %v552_v63 }
 0x144   : > { %v582_v55 = vpop.permute.xlu1 %581 }
 0x145   : > { %v586_v37 = vsel %vm585_vm7, %v582_v55, %v584_v53  ;;  %v587_v38 = vsel %vm585_vm7, %v584_v53, %v582_v55  ;;  %v526_v53 = vadd.f32 %v524_v32, %v499_v46 }
 0x146   : > { %v597_v52 = vmul.f32 %v593_v24, %v586_v37  ;;  %v598_v54 = vmul.f32 %v594_v34, %v587_v38  ;;  %v708_v34 = vand.u32 4294901760, %v707_v33 }
 0x147   : > { %v553_v0 = vadd.f32 %v551_v51, %v526_v53 }
 0x148   : > { %v604_v1 = vmul.f32 %v602_v27, %v597_v52  ;;  %v605_v2 = vmul.f32 %v602_v27, %v598_v54  ;;  %v709_v36 = vsub.f32 %v707_v33, %v708_v34 }
 0x149   : > { %v580_v7 = vadd.f32 %v578_v58, %v553_v0 }
 0x14a   : > { %v606_v9 = vadd.f32 %v604_v1, %v579_v6  ;;  %v710_v40 = vand.u32 4294901760, %v709_v36 }
 0x14b   : > { %v607_v10 = vadd.f32 %v605_v2, %v580_v7 }
 0x14c   : > { %v609_v21 = vpop.permute.xlu1 %608 }
 0x14d   : > { %v613_v48 = vsel %vm612_vm8, %v609_v21, %v611_v16  ;;  %v614_v49 = vsel %vm612_vm8, %v611_v16, %v609_v21 }
 0x14e   : > { %v624_v59 = vmul.f32 %v620_v43, %v613_v48  ;;  %v625_v60 = vmul.f32 %v621_v47, %v614_v49  ;;  %v836_v48 = vld [vmem:[%s1582_s8] sm:$0xf] }
 0x14f   : > { %v682_v49 = vld [vmem:[%s1581_s7] sm:$0xff]  ;;  %v839_v51 = vsel %vm837_vm11, %v836_v48, 0 }
 0x150   : > { %v631_v45 = vmul.f32 %v629_v3, %v624_v59  ;;  %v632_v8 = vmul.f32 %v629_v3, %v625_v60  ;;  %v858_v54 = vand.u32 4294901760, %v839_v51 }
 0x152   : > { %v633_v13 = vadd.f32 %v631_v45, %v606_v9  ;;  %v634_v14 = vadd.f32 %v632_v8, %v607_v10  ;;  %v859_v57 = vsub.f32 %v839_v51, %v858_v54 }
 0x154   : > { %v636_v55 = vpop.permute.xlu1 %635  ;;  %v860_v59 = vand.u32 4294901760, %v859_v57 }
 0x155   : > { %v640_v4 = vsel %vm639_vm9, %v636_v55, %v638_v61  ;;  %v641_v5 = vsel %vm639_vm9, %v638_v61, %v636_v55 }
 0x156   : > { %v651_v11 = vmul.f32 %v647_v62, %v640_v4  ;;  %v652_v42 = vmul.f32 %v648_v39, %v641_v5  ;;  %v861_v63 = vsub.f32 %v859_v57, %v860_v59 }
 0x158   : > { %v862_v2 = vand.u32 4294901760, %v861_v63 }
 0x15c   : > { %v656_v12 = vpop.permute.xlu1 %655 }
 0x15d   : > { %v658_v15 = vmul.f32 %v656_v12, %v651_v11  ;;  %v659_v16 = vmul.f32 %v656_v12, %v652_v42 }
 0x15f   : > { %v660_v17 = vadd.f32 %v658_v15, %v633_v13  ;;  %v661_v18 = vadd.f32 %v659_v16, %v634_v14 }
 0x161   : > { %v668_v20 = vadd.f32 %v666_v19, %v660_v17  ;;  %v669_v21 = vadd.f32 %v666_v19, %v661_v18 }
 0x163   : > { %v670_v22 = vmax.f32 %v668_v20, 0.0  ;;  %v671_v23 = vmax.f32 %v669_v21, 0.0 }
 0x165   : > { %v1517_v24 = vmin.f32 %v670_v22, 6.0  ;;  %v1519_v25 = vmin.f32 %v671_v23, 6.0 }
 0x167   : > { %v675_v26 = vsel %vm674_vm10, %v1517_v24, 0.0  ;;  %v676_v27 = vsel %vm674_vm10, %v1519_v25, 0.0 }
 0x168   : > { %v677_v28 = vadd.f32 %v676_v27, %v675_v26 }
 0x16a   : > { %678 = vadd.xlane.f32.xlu0 %v677_v28 }
 0x1dd   : > { %v679_v32 = vpop.xlane.xlu0 %678 }
 0x1de   : > { %v680_v37 = vmul.f32 0.00390625, %v679_v32 }
 0x1e0   : > { %v687_v38 = vsel %vm674_vm10, %v680_v37, 0 }
 0x1e1   : > { %v704_v41 = vand.u32 4294901760, %v687_v38 }
 0x1e3   : > { %v731_v43 = vsub.f32 %v687_v38, %v704_v41  ;;  %705 = vmatpush.msrb.mxu0 %v704_v41  ;;  %781 = vmatpush.msra.mxu3 %v704_v41 }
 0x1e4   : > { %711 = vmatmul.f32.vlgmr.msrb.gmra.mxu0 %v710_v40  ;;  %785 = vmatmul.f32.vlgmr.msra.gmra.mxu3 %v708_v34 }
 0x1e5   : > { %829 = vmatpush.msrb.mxu3 %v704_v41  ;;  %758 = vmatpush.msra.mxu2 %v731_v43  ;;  %v732_v47 = vand.u32 4294901760, %v731_v43 }
 0x1e6   : > { %761 = vmatmul.f32.vlgmr.msra.gmra.mxu2 %v707_v33 }
 0x1e7   : > { %807 = vmatpush.msrb.mxu2 %v732_v47  ;;  %v733_v44 = vsub.f32 %v731_v43, %v732_v47 }
 0x1e9   : > { %v734_v46 = vand.u32 4294901760, %v733_v44 }
 0x1eb   : > { %735 = vmatpush.msrb.mxu1 %v734_v46 }
 0x1ec   : > { %737 = vmatmul.f32.vlgmr.msrb.gmra.mxu1 %v706_v31  ;;  %831 = vmatmul.f32.vlgmr.msrb.gmra.mxu3 %v706_v31 }
 0x1ee   : > { %809 = vmatmul.f32.vlgmr.msrb.gmra.mxu2 %v706_v31 }
 0x261   : > { %v712_v50 = vpop.f32.mrf.mxu0 }
 0x262   : > { %v713_v52 = vadd.f32 %v712_v50, %v682_v49 }
 0x267   : > { %v786_v35 = vpop.f32.mrf.mxu3 }
 0x269   : > { %v762_v56 = vpop.f32.mrf.mxu2  ;;  %v738_v53 = vpop.f32.mrf.mxu1 }
 0x26a   : > { %v739_v55 = vadd.f32 %v738_v53, %v713_v52 }
 0x26c   : > { %v763_v58 = vadd.f32 %v762_v56, %v739_v55 }
 0x26e   : > { %v787_v60 = vadd.f32 %v786_v35, %v763_v58 }
 0x26f   : > { %v832_v62 = vpop.f32.mrf.mxu3 }
 0x271   : > { %v810_v61 = vpop.f32.mrf.mxu2 }
 0x272   : > { %v811_v39 = vadd.f32 %v810_v61, %v787_v60 }
 0x274   : > { %v833_v0 = vadd.f32 %v832_v62, %v811_v39 }
 0x276   : > { %v835_v1 = vmax.f32 %v833_v0, 0.0 }
 0x278   : > { %v856_v3 = vand.u32 4294901760, %v835_v1 }
 0x27a   : > { %v883_v4 = vsub.f32 %v835_v1, %v856_v3  ;;  %857 = vmatpush.msra.mxu0 %v856_v3  ;;  %933 = vmatpush.msra.mxu3 %v856_v3 }
 0x27b   : > { %863 = vmatmul.f32.vlgmr.msra.gmra.mxu0 %v862_v2  ;;  %937 = vmatmul.f32.vlgmr.msra.gmra.mxu3 %v860_v59 }
 0x27c   : > { %v884_v5 = vand.u32 4294901760, %v883_v4  ;;  %910 = vmatpush.msra.mxu2 %v883_v4 }
 0x27d   : > { %913 = vmatmul.f32.vlgmr.msra.gmra.mxu2 %v859_v57 }
 0x27e   : > { %v885_v6 = vsub.f32 %v883_v4, %v884_v5  ;;  %959 = vmatpush.msrb.mxu0 %v884_v5 }
 0x280   : > { %v886_v7 = vand.u32 4294901760, %v885_v6 }
 0x282   : > { %887 = vmatpush.msra.mxu1 %v886_v7 }
 0x283   : > { %889 = vmatmul.f32.vlgmr.msra.gmra.mxu1 %v858_v54  ;;  %961 = vmatmul.f32.vlgmr.msrb.gmra.mxu0 %v858_v54 }
 0x284   : > { %981 = vmatpush.msrb.mxu1 %v856_v3 }
 0x28b   : > { %983 = vmatmul.f32.vlgmr.msrb.gmra.mxu1 %v858_v54 }
 0x2f8   : > { %v864_v45 = vpop.f32.mrf.mxu0 }
 0x2fe   : > { %v938_v11 = vpop.f32.mrf.mxu3 }
 0x300   : > { %v890_v8 = vpop.f32.mrf.mxu1  ;;  %v914_v9 = vpop.f32.mrf.mxu2 }
 0x301   : > { %v891_v10 = vadd.f32 %v890_v8, %v864_v45  ;;  %v962_v12 = vpop.f32.mrf.mxu0 }
 0x303   : > { %v915_v42 = vadd.f32 %v914_v9, %v891_v10 }
 0x305   : > { %v939_v13 = vadd.f32 %v938_v11, %v915_v42 }
 0x307   : > { %v963_v14 = vadd.f32 %v962_v12, %v939_v13 }
 0x308   : > { %v984_v15 = vpop.f32.mrf.mxu1 }
 0x309   : > { %v985_v16 = vadd.f32 %v984_v15, %v963_v14 }
 0x30b   : > { %v987_v17 = vmul.f32 0.16666667, %v985_v16 }
 0x30d   : > { %v988_v18 = vadd.f32 0.5, %v987_v17 }
 0x30f   : > { %v989_v19 = vmax.f32 %v988_v18, 0.0 }
 0x311   : > { %v990_v20 = vmin.f32 %v989_v19, 1.0 }
 0x313   : > { %993 = vperm.xlu1 %1207, %v990_v20  }
 0x385   : > { %v994_v21 = vpop.permute.xlu1 %993 }
 0x386   : > { %v996_v22 = vmul.f32 %v994_v21, %v1517_v24  ;;  %v997_v23 = vmul.f32 %v994_v21, %v1519_v25  ;;  %v1005_v24 = vpop.permute.xlu2 %1004 }
 0x388   : > { %v999_v26 = vpack.c.bf16 %v996_v22, %v996_v22  ;;  %v1000_v27 = vpack.c.bf16 %v997_v23, %v997_v23 }
 0x38a   : > { %v1011_v28 = vsel %vm402_vm0, %v999_v26, 0  ;;  %v1014_v29 = vsel %vm402_vm0, %v1000_v27, 0 }
 0x38b   : > { %1023 = vmatpush.bf16.msrb.mxu2 %v1011_v28  ;;  %1036 = vmatpush.bf16.msrb.mxu3 %v1014_v29 }
 0x38e   : > { %1148 = vmatmul.msk.bf16.vlgmr.msrb.gmra.mxu2 %vm398_vm1, %v998_v30  ;;  %1149 = vmatmul.msk.bf16.vlgmr.msrb.gmra.mxu3 %vm398_vm1, %v998_v30 }
 0x411   : > { %v1025_v25 = vpop.f32.mrf.mxu2  ;;  %v1038_v31 = vpop.f32.mrf.mxu3 }
 0x412   : > { %v1026_v33 = vadd.f32 %v1025_v25, %v1005_v24  ;;  %v1039_v34 = vadd.f32 %v1038_v31, %v1005_v24 }
 0x414   : > { %v1042_v36 = vmax.f32 %v1026_v33, 0.0  ;;  %v1043_v32 = vmax.f32 %v1039_v34, 0.0 }
 0x416   : > { %v1044_v37 = vmin.f32 %v1042_v36, 6.0  ;;  %v1045_v38 = vmin.f32 %v1043_v32, 6.0 }
 0x418   : > { %1046 = vst [vmem:[%s379_s25] sm:$0xff] %v1044_v37 }
 0x419   : > { %1047 = vst [vmem:[%s379_s25 + $0x8] sm:$0xff] %v1045_v38  ;;  %v1027_v40 = vpop.f32.mrf.mxu2  ;;  %v1040_v41 = vpop.f32.mrf.mxu3 }
 0x41a   : > { %1235 = shalt.err (!%p1232_p3)
}
 0x41b   : > { %1157 = dma.vmem_to_hbm [thread:$0]  (%p1379_p5), %s1063_s29, 256, %s1065_s30, %s1049_s21  }
 0x41c PF: > { %p1163_p4 = scmp.ge.s32.totalorder %s1270_s20, 2  ;;  %s1076_s13 = sand.u32 1, %s1258_s17  }
 0x41d   : > { %s1077_s25 = scalar_lea.sflag [#allocation3], %s1076_s13 }
 0x41e   : > { %p1160_p7 = pnand %p1163_p4, %p1383_p6 }
 0x420   : > { %p1161_p8 = pneg %p1160_p7 }
 0x422   : > { %1253 = dma.done.wait (%p1161_p8), %s1077_s25, 256  }
 0x423   : > { %1255 = vsyncadd (%p1161_p8), %s1077_s25, 4294967040  ;;  %p21_p9 = scmp.ge.s32.totalorder %s1366_s23, 4   ;;  %s1590_s17 = smov %s1262_s18 }
 0x424   : > { %s1591_s18 = smov %s1266_s19  ;;  %s1592_s19 = smov %s1377_s26 }
 0x425   : > { %s1593_s20 = smov %s1366_s23  ;;  %23 = sbr.rel (!%p21_p9) target bundleno = 5 (0x5), region = 114 }
 0x42a   :  { %1083 = vsyncpa [#allocation3], 1 }
 0x42b   :  { %1085 = vsyncpa [#allocation3 + $0x1], 1 }

</bundles_post_ra>
